<compile_context>
chip_gen: v7x
topology: tpu7x:2x2x1
jax: 0.10.0
libtpu: 0.0.40
codegen_flags: <defaults>
</compile_context>

<pallas_src>
import jax
import jax.numpy as jnp
from jax.experimental import pallas as pl
from jax.experimental.pallas import tpu as pltpu

# Model hyper-params implied by DNN.__init__ (small synthetic sizes):
NAGENTS = 8                 # opt.nagents        -> input features
H1 = 64                     # input_layer out
H2 = 32                     # middle1_layer out
H3 = 32                     # middle2_layer out
N_BS = 4                    # scenario.BS_Number()
N_CHANNEL = 4               # sce.nChannel
OUT_DIM = N_BS * N_CHANNEL  # output_layer out (=16; lane under-fill accepted)

BATCH = 256                 # many forward passes stacked into one call
TILE_B = 128                # MXU-row-aligned batch tile per grid step


def dnn_kernel(x_ref,
               w1_ref, b1_ref,
               w2_ref, b2_ref,
               w3_ref, b3_ref,
               w4_ref, b4_ref,
               out_ref):
    """4-layer MLP forward on one (TILE_B, NAGENTS) batch tile.

    bf16 operands feed the MXU (single-pass matmul), accumulation in f32;
    bias add + ReLU stay in f32 on the VPU.
    """
    x = x_ref[...].astype(jnp.bfloat16)

    # Layer 1: Linear(nagents, 64) + ReLU
    h = jnp.dot(x, w1_ref[...], preferred_element_type=jnp.float32) + b1_ref[...]
    h = jnp.maximum(h, 0.0)

    # Layer 2: Linear(64, 32) + ReLU
    h = jnp.dot(h.astype(jnp.bfloat16), w2_ref[...],
                preferred_element_type=jnp.float32) + b2_ref[...]
    h = jnp.maximum(h, 0.0)

    # Layer 3: Linear(32, 32) + ReLU
    h = jnp.dot(h.astype(jnp.bfloat16), w3_ref[...],
                preferred_element_type=jnp.float32) + b3_ref[...]
    h = jnp.maximum(h, 0.0)

    # Output layer: Linear(32, BS_Number * nChannel), no activation
    out = jnp.dot(h.astype(jnp.bfloat16), w4_ref[...],
                  preferred_element_type=jnp.float32) + b4_ref[...]
    out_ref[...] = out.astype(out_ref.dtype)


def dnn_forward(x, params, *, tile_b=TILE_B):
    """Batched forward. Grid over batch tiles; weights resident in VMEM."""
    (w1, b1, w2, b2, w3, b3, w4, b4) = params
    batch = x.shape[0]

    # Pad batch to a multiple of tile_b (sublane/MXU alignment), slice after.
    padded = pl.cdiv(batch, tile_b) * tile_b
    if padded != batch:
        x = jnp.pad(x, ((0, padded - batch), (0, 0)))
    nb = padded // tile_b

    # Whole-array VMEM operands (no block_shape) -> loaded once, resident
    # across all grid iterations.
    resident = pl.BlockSpec(memory_space=pltpu.MemorySpace.VMEM)

    out = pl.pallas_call(
        dnn_kernel,
        out_shape=jax.ShapeDtypeStruct((padded, OUT_DIM), jnp.float32),
        grid=(nb,),
        in_specs=[
            pl.BlockSpec((tile_b, NAGENTS), lambda i: (i, 0)),  # x: tiled
            resident, resident,                                  # w1, b1
            resident, resident,                                  # w2, b2
            resident, resident,                                  # w3, b3
            resident, resident,                                  # w4, b4
        ],
        out_specs=pl.BlockSpec((tile_b, OUT_DIM), lambda i: (i, 0)),
        compiler_params=pltpu.CompilerParams(
            dimension_semantics=("parallel",)),   # v7x: split batch across TCs
    )(x, w1, b1, w2, b2, w3, b3, w4, b4)

    if padded != batch:
        out = out[:batch]
    return out


def init_params(key):
    """Deterministic parameter init (PyTorch-like uniform fan-in scaling)."""
    def linear_init(k, fan_in, fan_out):
        kw, kb = jax.random.split(k)
        bound = 1.0 / jnp.sqrt(fan_in)
        # Stored as (in, out); bf16 so the MXU takes a single pass.
        w = jax.random.uniform(kw, (fan_in, fan_out), jnp.float32,
                               -bound, bound).astype(jnp.bfloat16)
        # Biases kept 2D (1, out) f32 for clean TPU broadcasting in-kernel.
        b = jax.random.uniform(kb, (1, fan_out), jnp.float32, -bound, bound)
        return w, b

    k1, k2, k3, k4 = jax.random.split(key, 4)
    w1, b1 = linear_init(k1, NAGENTS, H1)
    w2, b2 = linear_init(k2, H1, H2)
    w3, b3 = linear_init(k3, H2, H3)
    w4, b4 = linear_init(k4, H3, OUT_DIM)
    return (w1, b1, w2, b2, w3, b3, w4, b4)


def reference_forward(x, params):
    """Pure-JAX reference with identical bf16-input / f32-accum numerics."""
    (w1, b1, w2, b2, w3, b3, w4, b4) = params

    def lin(a, w, b):
        return jnp.dot(a.astype(jnp.bfloat16), w,
                       preferred_element_type=jnp.float32) + b

    h = jnp.maximum(lin(x, w1, b1), 0.0)
    h = jnp.maximum(lin(h, w2, b2), 0.0)
    h = jnp.maximum(lin(h, w3, b3), 0.0)
    return lin(h, w4, b4)


if __name__ == "__main__":
    key = jax.random.PRNGKey(0)
    k_params, k_x = jax.random.split(key)
    params = init_params(k_params)
    x = jax.random.normal(k_x, (BATCH, NAGENTS), jnp.float32)

    out = dnn_forward(x, params)
    out = jax.block_until_ready(out)

    ref = reference_forward(x, params)
    assert out.shape == (BATCH, OUT_DIM)
    assert jnp.allclose(out, ref, atol=1e-2, rtol=1e-2), (
        float(jnp.max(jnp.abs(out - ref))))

    print("KERNEL_OK")
</pallas_src>

<mosaic_0001>
module attributes {stable_mosaic.version = 11 : i64} {
  func.func @dnn_kernel(%arg0: i32, %arg1: memref<128x8xf32, #tpu.memory_space<vmem>>, %arg2: memref<8x64xbf16, #tpu.memory_space<vmem>>, %arg3: memref<1x64xf32, #tpu.memory_space<vmem>>, %arg4: memref<64x32xbf16, #tpu.memory_space<vmem>>, %arg5: memref<1x32xf32, #tpu.memory_space<vmem>>, %arg6: memref<32x32xbf16, #tpu.memory_space<vmem>>, %arg7: memref<1x32xf32, #tpu.memory_space<vmem>>, %arg8: memref<32x16xbf16, #tpu.memory_space<vmem>>, %arg9: memref<1x16xf32, #tpu.memory_space<vmem>>, %arg10: memref<128x16xf32, #tpu.memory_space<vmem>>) attributes {dimension_semantics = [#tpu.dimension_semantics<parallel>], iteration_bounds = array<i64: 2>, scalar_prefetch = 0 : i64, scratch_operands = 0 : i64, tpu.core_type = #tpu.core_type<tc>, window_params = [{transform_indices = @transform_0, window_bounds = array<i64: 128, 8>}, {pipeline_mode = #tpu.pipeline_mode<synchronous>, transform_indices = @transform_1, window_bounds = array<i64: 8, 64>}, {pipeline_mode = #tpu.pipeline_mode<synchronous>, transform_indices = @transform_2, window_bounds = array<i64: 1, 64>}, {pipeline_mode = #tpu.pipeline_mode<synchronous>, transform_indices = @transform_3, window_bounds = array<i64: 64, 32>}, {pipeline_mode = #tpu.pipeline_mode<synchronous>, transform_indices = @transform_4, window_bounds = array<i64: 1, 32>}, {pipeline_mode = #tpu.pipeline_mode<synchronous>, transform_indices = @transform_5, window_bounds = array<i64: 32, 32>}, {pipeline_mode = #tpu.pipeline_mode<synchronous>, transform_indices = @transform_6, window_bounds = array<i64: 1, 32>}, {pipeline_mode = #tpu.pipeline_mode<synchronous>, transform_indices = @transform_7, window_bounds = array<i64: 32, 16>}, {pipeline_mode = #tpu.pipeline_mode<synchronous>, transform_indices = @transform_8, window_bounds = array<i64: 1, 16>}, {transform_indices = @transform_9, window_bounds = array<i64: 128, 16>}]} {
    %c0 = arith.constant 0 : index
    %c0_0 = arith.constant 0 : index
    %0 = vector.load %arg1[%c0, %c0_0] : memref<128x8xf32, #tpu.memory_space<vmem>>, vector<128x8xf32>
    %1 = arith.truncf %0 : vector<128x8xf32> to vector<128x8xbf16>
    %c0_1 = arith.constant 0 : index
    %c0_2 = arith.constant 0 : index
    %2 = vector.load %arg2[%c0_1, %c0_2] : memref<8x64xbf16, #tpu.memory_space<vmem>>, vector<8x64xbf16>
    %cst = arith.constant dense<0.000000e+00> : vector<128x64xf32>
    %3 = tpu.matmul %1, %2, %cst {dimension_numbers = #tpu.dot_dimension_numbers<[1], [0], [0], [1], [0, 0, 1, 1], [], []>} : vector<128x8xbf16>, vector<8x64xbf16>, vector<128x64xf32> -> vector<128x64xf32>
    %c0_3 = arith.constant 0 : index
    %c0_4 = arith.constant 0 : index
    %4 = vector.load %arg3[%c0_3, %c0_4] : memref<1x64xf32, #tpu.memory_space<vmem>>, vector<1x64xf32>
    %5 = vector.broadcast %4 : vector<1x64xf32> to vector<128x64xf32>
    %6 = arith.addf %3, %5 : vector<128x64xf32>
    %cst_5 = arith.constant 0.000000e+00 : f32
    %7 = vector.broadcast %cst_5 : f32 to vector<128x64xf32>
    %8 = arith.maximumf %6, %7 : vector<128x64xf32>
    %9 = arith.truncf %8 : vector<128x64xf32> to vector<128x64xbf16>
    %c0_6 = arith.constant 0 : index
    %c0_7 = arith.constant 0 : index
    %10 = vector.load %arg4[%c0_6, %c0_7] : memref<64x32xbf16, #tpu.memory_space<vmem>>, vector<64x32xbf16>
    %cst_8 = arith.constant dense<0.000000e+00> : vector<128x32xf32>
    %11 = tpu.matmul %9, %10, %cst_8 {dimension_numbers = #tpu.dot_dimension_numbers<[1], [0], [0], [1], [0, 0, 1, 1], [], []>} : vector<128x64xbf16>, vector<64x32xbf16>, vector<128x32xf32> -> vector<128x32xf32>
    %c0_9 = arith.constant 0 : index
    %c0_10 = arith.constant 0 : index
    %12 = vector.load %arg5[%c0_9, %c0_10] : memref<1x32xf32, #tpu.memory_space<vmem>>, vector<1x32xf32>
    %13 = vector.broadcast %12 : vector<1x32xf32> to vector<128x32xf32>
    %14 = arith.addf %11, %13 : vector<128x32xf32>
    %cst_11 = arith.constant 0.000000e+00 : f32
    %15 = vector.broadcast %cst_11 : f32 to vector<128x32xf32>
    %16 = arith.maximumf %14, %15 : vector<128x32xf32>
    %17 = arith.truncf %16 : vector<128x32xf32> to vector<128x32xbf16>
    %c0_12 = arith.constant 0 : index
    %c0_13 = arith.constant 0 : index
    %18 = vector.load %arg6[%c0_12, %c0_13] : memref<32x32xbf16, #tpu.memory_space<vmem>>, vector<32x32xbf16>
    %cst_14 = arith.constant dense<0.000000e+00> : vector<128x32xf32>
    %19 = tpu.matmul %17, %18, %cst_14 {dimension_numbers = #tpu.dot_dimension_numbers<[1], [0], [0], [1], [0, 0, 1, 1], [], []>} : vector<128x32xbf16>, vector<32x32xbf16>, vector<128x32xf32> -> vector<128x32xf32>
    %c0_15 = arith.constant 0 : index
    %c0_16 = arith.constant 0 : index
    %20 = vector.load %arg7[%c0_15, %c0_16] : memref<1x32xf32, #tpu.memory_space<vmem>>, vector<1x32xf32>
    %21 = vector.broadcast %20 : vector<1x32xf32> to vector<128x32xf32>
    %22 = arith.addf %19, %21 : vector<128x32xf32>
    %cst_17 = arith.constant 0.000000e+00 : f32
    %23 = vector.broadcast %cst_17 : f32 to vector<128x32xf32>
    %24 = arith.maximumf %22, %23 : vector<128x32xf32>
    %25 = arith.truncf %24 : vector<128x32xf32> to vector<128x32xbf16>
    %c0_18 = arith.constant 0 : index
    %c0_19 = arith.constant 0 : index
    %26 = vector.load %arg8[%c0_18, %c0_19] : memref<32x16xbf16, #tpu.memory_space<vmem>>, vector<32x16xbf16>
    %cst_20 = arith.constant dense<0.000000e+00> : vector<128x16xf32>
    %27 = tpu.matmul %25, %26, %cst_20 {dimension_numbers = #tpu.dot_dimension_numbers<[1], [0], [0], [1], [0, 0, 1, 1], [], []>} : vector<128x32xbf16>, vector<32x16xbf16>, vector<128x16xf32> -> vector<128x16xf32>
    %c0_21 = arith.constant 0 : index
    %c0_22 = arith.constant 0 : index
    %28 = vector.load %arg9[%c0_21, %c0_22] : memref<1x16xf32, #tpu.memory_space<vmem>>, vector<1x16xf32>
    %29 = vector.broadcast %28 : vector<1x16xf32> to vector<128x16xf32>
    %30 = arith.addf %27, %29 : vector<128x16xf32>
    %c0_23 = arith.constant 0 : index
    %c0_24 = arith.constant 0 : index
    %31 = vector.load %arg10[%c0_23, %c0_24] : memref<128x16xf32, #tpu.memory_space<vmem>>, vector<128x16xf32>
    tpu.vector_store %arg10[%c0_23, %c0_24], %30 {strides = array<i32>} : memref<128x16xf32, #tpu.memory_space<vmem>>, vector<128x16xf32>,
    return
  }
  func.func @transform_0(%arg0: i32) -> (i32, i32) {
    %c0_i32 = arith.constant 0 : i32
    %c0_i32_0 = arith.constant 0 : i32
    return %arg0, %c0_i32 : i32, i32
  }
  func.func @transform_1(%arg0: i32) -> (i32, i32) {
    %c0_i32 = arith.constant 0 : i32
    %c0_i32_0 = arith.constant 0 : i32
    %c0_i32_1 = arith.constant 0 : i32
    return %c0_i32, %c0_i32_0 : i32, i32
  }
  func.func @transform_2(%arg0: i32) -> (i32, i32) {
    %c0_i32 = arith.constant 0 : i32
    %c0_i32_0 = arith.constant 0 : i32
    %c0_i32_1 = arith.constant 0 : i32
    return %c0_i32, %c0_i32_0 : i32, i32
  }
  func.func @transform_3(%arg0: i32) -> (i32, i32) {
    %c0_i32 = arith.constant 0 : i32
    %c0_i32_0 = arith.constant 0 : i32
    %c0_i32_1 = arith.constant 0 : i32
    return %c0_i32, %c0_i32_0 : i32, i32
  }
  func.func @transform_4(%arg0: i32) -> (i32, i32) {
    %c0_i32 = arith.constant 0 : i32
    %c0_i32_0 = arith.constant 0 : i32
    %c0_i32_1 = arith.constant 0 : i32
    return %c0_i32, %c0_i32_0 : i32, i32
  }
  func.func @transform_5(%arg0: i32) -> (i32, i32) {
    %c0_i32 = arith.constant 0 : i32
    %c0_i32_0 = arith.constant 0 : i32
    %c0_i32_1 = arith.constant 0 : i32
    return %c0_i32, %c0_i32_0 : i32, i32
  }
  func.func @transform_6(%arg0: i32) -> (i32, i32) {
    %c0_i32 = arith.constant 0 : i32
    %c0_i32_0 = arith.constant 0 : i32
    %c0_i32_1 = arith.constant 0 : i32
    return %c0_i32, %c0_i32_0 : i32, i32
  }
  func.func @transform_7(%arg0: i32) -> (i32, i32) {
    %c0_i32 = arith.constant 0 : i32
    %c0_i32_0 = arith.constant 0 : i32
    %c0_i32_1 = arith.constant 0 : i32
    return %c0_i32, %c0_i32_0 : i32, i32
  }
  func.func @transform_8(%arg0: i32) -> (i32, i32) {
    %c0_i32 = arith.constant 0 : i32
    %c0_i32_0 = arith.constant 0 : i32
    %c0_i32_1 = arith.constant 0 : i32
    return %c0_i32, %c0_i32_0 : i32, i32
  }
  func.func @transform_9(%arg0: i32) -> (i32, i32) {
    %c0_i32 = arith.constant 0 : i32
    %c0_i32_0 = arith.constant 0 : i32
    return %arg0, %c0_i32 : i32, i32
  }
}

</mosaic_0001>

<bundles_post_ra>
// kernel: tpu_custom_call.1
= control target key start
LH: loop header
LB: loop body
LE: loop exit
PB: predicated region body
PF: predicated region fallthrough
CT: control target
= control target key end

     0   :  { %s1343_s30 = smov 0   ;;  %s1490_s0 = inlined_call_operand.vmem [shape: f32[256,8], index: 0, kind: input, shape index: {}]   ;;  %s1491_s1 = inlined_call_operand.vmem [shape: bf16[8,64], index: 1, kind: input, shape index: {}]   ;;  %s1492_s2 = inlined_call_operand.vmem [shape: f32[1,64], index: 2, kind: input, shape index: {}]   ;;  %s1493_s3 = inlined_call_operand.vmem [shape: bf16[64,32], index: 3, kind: input, shape index: {}]   ;;  %s1494_s4 = inlined_call_operand.vmem [shape: f32[1,32], index: 4, kind: input, shape index: {}]   ;;  %s1495_s5 = inlined_call_operand.vmem [shape: bf16[32,32], index: 5, kind: input, shape index: {}]   ;;  %s1496_s6 = inlined_call_operand.vmem [shape: f32[1,32], index: 6, kind: input, shape index: {}]   ;;  %s1497_s7 = inlined_call_operand.vmem [shape: bf16[32,16], index: 7, kind: input, shape index: {}]   ;;  %s1498_s8 = inlined_call_operand.vmem [shape: f32[1,16], index: 8, kind: input, shape index: {}]   ;;  %s1499_s9 = inlined_call_operand.vmem [shape: f32[256,16], index: 9, kind: output, shape index: {}]  }
   0x1 LB: > { %s1090_s10 = sadd.s32 4294967295, %s1291_s30   ;;  %p1094_p0 = scmp.ge.s32.totalorder %s1291_s30, 1  ;;  %s1291_s30 = sphi %s1343_s30, %s19_s30  }
   0x2   : > { %p288_p1 = scmp.lt.s32.totalorder %s1291_s30, 3 }
   0x4   : > { %p289_p2 = pnand %p1094_p0, %p288_p1 }
   0x5   : > { %v361_v0 = vld [vmem:[%s1491_s1] sm:$0xf] (!%p289_p2)  ;;  %vm394_vm0 = vcmask (!%p289_p2), 1043456   ;;  %s1095_s13 = sshll.u32 (!%p289_p2), %s1090_s10, 4  ;;  %v1278_v3 = vld [vmem:[%s1493_s3 + $0x8] sm:$0xff] (!%p289_p2)   ;;  %vm369_vm1 = vcmask (!%p289_p2), 64512  }
   0x6   : > { %292 = sbr.rel (%p289_p2) target bundleno = 928 (0x3a0), region = 56  ;;  %v1277_v1 = vld [vmem:[%s1493_s3] sm:$0xff] (!%p289_p2)   ;;  %1268 = vmatprep.subr.msk.bf16.mxu0 (!%p289_p2), %vm394_vm0, %v361_v0  ;;  %v396_v2 = vsel (!%p289_p2), %vm394_vm0, %v361_v0, 0  ;;  %p325_p3 = scmp.lt.s32.totalorder (!%p289_p2), %s1095_s13, 31  ;;  %v1279_v28 = vld [vmem:[%s1493_s3 + $0x10] sm:$0xff] (!%p289_p2)   ;;  %v1280_v29 = vld [vmem:[%s1493_s3 + $0x18] sm:$0xff] (!%p289_p2)  }
   0x7   : > { %1187 = vmatpush3.bf16.msra.mxu0 (!%p289_p2), %v396_v2  ;;  %1204 = vmatprep.subr.bf16.mxu1 (!%p289_p2), %v1277_v1  ;;  %v1281_v30 = vld [vmem:[%s1495_s5] sm:$0xff] (!%p289_p2)   ;;  %v1282_v31 = vld [vmem:[%s1495_s5 + $0x8] sm:$0xff] (!%p289_p2)   ;;  %vm558_vm2 = vcmask (!%p289_p2), 523264   ;;  %vm727_vm3 = vcmask (!%p289_p2), 261120   ;;  %vm1017_vm4 = vcmask (!%p289_p2), 130048  }
   0x8   : > { %1205 = vmatpush3.bf16.msra.mxu1 (!%p289_p2), %v1277_v1  ;;  %1228 = vmatprep.subr.bf16.mxu0 (!%p289_p2), %v1281_v30  ;;  %v1099_v32 = vld [vmem:[%s1492_s2] ss:$0 sm:$0xff] (!%p289_p2) }
   0x9   : > { %1206 = vmatprep.subr.bf16.mxu1 (!%p289_p2), %v1278_v3 }
   0xc   : > { %1207 = vmatpush3.bf16.msra.mxu1 (!%p289_p2), %v1278_v3 }
   0xd   : > { %s1501_s13 = smov (!%p325_p3, %s1095_s13), 31  ;;  %1208 = vmatprep.subr.bf16.mxu1 %v1279_v28 }
   0xe   : > { %s1096_s18 = sshll.u32 %s1501_s13, 3 }
   0xf   : > { %s1368_s21 = scalar_lea.vmem %s1490_s0, %s1096_s18  ;;  %s1453_s26 = scalar_lea.vmem %s1499_s9, %s1096_s18 }
  0x10   : > { %v337_v4 = vld [vmem:[%s1368_s21] sm:$0xff]  ;;  %v338_v5 = vld [vmem:[%s1368_s21 + $0x8] sm:$0xff]  ;;  %v339_v6 = vld [vmem:[%s1368_s21 + $0x10] sm:$0xff]  ;;  %1209 = vmatpush3.bf16.msra.mxu1 %v1279_v28 }
  0x11   : > { %v353_v7 = vpack.c.bf16 %v338_v5, %v337_v4  ;;  %v340_v8 = vld [vmem:[%s1368_s21 + $0x18] sm:$0xff]  ;;  %v341_v9 = vld [vmem:[%s1368_s21 + $0x20] sm:$0xff]  ;;  %v342_v10 = vld [vmem:[%s1368_s21 + $0x28] sm:$0xff]  ;;  %1210 = vmatprep.subr.bf16.mxu1 %v1280_v29 }
  0x12   : > { %v354_v11 = vpack.c.bf16 %v340_v8, %v339_v6  ;;  %v355_v12 = vpack.c.bf16 %v342_v10, %v341_v9  ;;  %v343_v13 = vld [vmem:[%s1368_s21 + $0x30] sm:$0xff]  ;;  %v344_v14 = vld [vmem:[%s1368_s21 + $0x38] sm:$0xff]  ;;  %v345_v15 = vld [vmem:[%s1368_s21 + $0x40] sm:$0xff] }
  0x13   : > { %1188 = vmatprep.mubr.msk.bf16.mxu0 %vm369_vm1, %v353_v7  ;;  %v346_v16 = vld [vmem:[%s1368_s21 + $0x48] sm:$0xff]  ;;  %v356_v17 = vpack.c.bf16 %v344_v14, %v343_v13  ;;  %v347_v19 = vld [vmem:[%s1368_s21 + $0x50] sm:$0xff]  ;;  %v348_v20 = vld [vmem:[%s1368_s21 + $0x58] sm:$0xff] }
  0x14   : > { %1189 = vmatmul.mubr.msk.bf16.vlgmr.msra.gmra.mrb[0].mxu0 %vm369_vm1, %v354_v11  ;;  %v357_v18 = vpack.c.bf16 %v346_v16, %v345_v15  ;;  %v349_v21 = vld [vmem:[%s1368_s21 + $0x60] sm:$0xff]  ;;  %v350_v22 = vld [vmem:[%s1368_s21 + $0x68] sm:$0xff]  ;;  %v358_v23 = vpack.c.bf16 %v348_v20, %v347_v19  ;;  %v351_v25 = vld [vmem:[%s1368_s21 + $0x70] sm:$0xff]  ;;  %1211 = vmatpush3.bf16.msra.mxu1 %v1280_v29 }
  0x15   : > { %1192 = vmatprep.mubr.msk.bf16.mxu0 %vm369_vm1, %v355_v12  ;;  %v359_v24 = vpack.c.bf16 %v350_v22, %v349_v21  ;;  %v352_v26 = vld [vmem:[%s1368_s21 + $0x78] sm:$0xff]  ;;  %1229 = vmatpush3.bf16.msra.mxu0 %v1281_v30 }
  0x16   : > { %v360_v27 = vpack.c.bf16 %v352_v26, %v351_v25  ;;  %1230 = vmatprep.subr.bf16.mxu0 %v1282_v31  ;;  %v1283_v25 = vld [vmem:[%s1497_s7] sm:$0xff]   ;;  %v1284_v26 = vld [vmem:[%s1497_s7 + $0x8] sm:$0xff]  }
  0x17   : > { %1248 = vmatprep.subr.bf16.mxu1 %v1283_v25 }
  0x19   : > { %1231 = vmatpush3.bf16.msra.mxu0 %v1282_v31 }
  0x1c   : > { %1193 = vmatmul.mubr.msk.bf16.gmra.mrb[4].mxu0 %vm369_vm1, %v356_v17 }
  0x1d   : > { %1196 = vmatprep.mubr.msk.bf16.mxu0 %vm369_vm1, %v357_v18 }
  0x24   : > { %1197 = vmatmul.mubr.msk.bf16.gmra.mrb[8].mxu0 %vm369_vm1, %v358_v23 }
  0x25   : > { %1200 = vmatprep.mubr.msk.bf16.mxu0 %vm369_vm1, %v359_v24 }
  0x2c   : > { %1201 = vmatmul.mubr.msk.bf16.gmra.mrb[12].mxu0 %vm369_vm1, %v360_v27  ;;  %v1108_v27 = vld [vmem:[%s1494_s4] ss:$0 sm:$0xff] }
  0xe7   : > { %v1190_v33 = vpop.f32.mrb[0].mxu0 }
  0xe8   : > { %v441_v34 = vadd.f32 %v1190_v33, %v1099_v32  ;;  %v432_v35 = vpop.f32.mrb[1].mxu0 }
  0xe9   : > { %v433_v36 = vadd.f32 %v1099_v32, %v432_v35  ;;  %v1191_v37 = vpop.f32.mrb[2].mxu0 }
  0xea   : > { %v444_v38 = vadd.f32 %v1191_v37, %v1099_v32  ;;  %v435_v39 = vpop.f32.mrb[3].mxu0  ;;  %v497_v41 = vmax.f32 %v441_v34, 0.0 }
  0xeb   : > { %v436_v40 = vadd.f32 %v1099_v32, %v435_v39  ;;  %v495_v43 = vmax.f32 %v433_v36, 0.0 }
  0xec   : > { %v498_v42 = vmax.f32 %v444_v38, 0.0 }
  0xed   : > { %v496_v44 = vmax.f32 %v436_v40, 0.0 }
  0xee   : > { %v512_v45 = vpack.c.bf16 %v498_v42, %v497_v41 }
  0xef   : > { %v1194_v46 = vpop.f32.mrb[4].mxu0  ;;  %v511_v47 = vpack.c.bf16 %v496_v44, %v495_v43 }
  0xf0   : > { %v457_v48 = vadd.f32 %v1194_v46, %v1099_v32  ;;  %v448_v49 = vpop.f32.mrb[5].mxu0 }
  0xf1   : > { %v449_v50 = vadd.f32 %v1099_v32, %v448_v49  ;;  %v1195_v51 = vpop.f32.mrb[6].mxu0  ;;  %1212 = vmatprep.mubr.msk.bf16.mxu1 %vm558_vm2, %v511_v47 }
  0xf2   : > { %v460_v52 = vadd.f32 %v1195_v51, %v1099_v32  ;;  %v451_v53 = vpop.f32.mrb[7].mxu0  ;;  %1213 = vmatmul.mubr.msk.bf16.vlgmr.msra.gmra.mrb[0].mxu1 %vm558_vm2, %v512_v45  ;;  %v501_v55 = vmax.f32 %v457_v48, 0.0 }
  0xf3   : > { %v452_v54 = vadd.f32 %v1099_v32, %v451_v53  ;;  %v499_v57 = vmax.f32 %v449_v50, 0.0  ;;  %1249 = vmatpush3.bf16.msra.mxu1 %v1283_v25 }
  0xf4   : > { %v502_v56 = vmax.f32 %v460_v52, 0.0  ;;  %1250 = vmatprep.subr.bf16.mxu1 %v1284_v26 }
  0xf5   : > { %v500_v58 = vmax.f32 %v452_v54, 0.0 }
  0xf6   : > { %v514_v59 = vpack.c.bf16 %v502_v56, %v501_v55 }
  0xf7   : > { %v513_v60 = vpack.c.bf16 %v500_v58, %v499_v57  ;;  %v1198_v61 = vpop.f32.mrb[8].mxu0  ;;  %1251 = vmatpush3.bf16.msra.mxu1 %v1284_v26 }
  0xf8   : > { %v473_v62 = vadd.f32 %v1198_v61, %v1099_v32  ;;  %v464_v63 = vpop.f32.mrb[9].mxu0 }
  0xf9   : > { %v465_v0 = vadd.f32 %v1099_v32, %v464_v63  ;;  %v1199_v1 = vpop.f32.mrb[10].mxu0  ;;  %1216 = vmatprep.mubr.msk.bf16.mxu1 %vm558_vm2, %v513_v60 }
  0xfa   : > { %v476_v2 = vadd.f32 %v1199_v1, %v1099_v32  ;;  %v467_v3 = vpop.f32.mrb[11].mxu0  ;;  %1217 = vmatmul.mubr.msk.bf16.gmra.mrb[4].mxu1 %vm558_vm2, %v514_v59  ;;  %v505_v5 = vmax.f32 %v473_v62, 0.0 }
  0xfb   : > { %v468_v4 = vadd.f32 %v1099_v32, %v467_v3  ;;  %v503_v7 = vmax.f32 %v465_v0, 0.0 }
  0xfc   : > { %v506_v6 = vmax.f32 %v476_v2, 0.0 }
  0xfd   : > { %v504_v8 = vmax.f32 %v468_v4, 0.0 }
  0xfe   : > { %v516_v9 = vpack.c.bf16 %v506_v6, %v505_v5 }
  0xff   : > { %v515_v10 = vpack.c.bf16 %v504_v8, %v503_v7  ;;  %v1202_v11 = vpop.f32.mrb[12].mxu0 }
 0x100   : > { %v489_v12 = vadd.f32 %v1202_v11, %v1099_v32  ;;  %v480_v13 = vpop.f32.mrb[13].mxu0 }
 0x101   : > { %v481_v14 = vadd.f32 %v1099_v32, %v480_v13  ;;  %v1203_v15 = vpop.f32.mrb[14].mxu0  ;;  %1220 = vmatprep.mubr.msk.bf16.mxu1 %vm558_vm2, %v515_v10 }
 0x102   : > { %v492_v16 = vadd.f32 %v1203_v15, %v1099_v32  ;;  %v483_v17 = vpop.f32.mrb[15].mxu0  ;;  %1221 = vmatmul.mubr.msk.bf16.gmra.mrb[8].mxu1 %vm558_vm2, %v516_v9  ;;  %v509_v19 = vmax.f32 %v489_v12, 0.0 }
 0x103   : > { %v484_v18 = vadd.f32 %v1099_v32, %v483_v17  ;;  %v507_v21 = vmax.f32 %v481_v14, 0.0 }
 0x104   : > { %v510_v20 = vmax.f32 %v492_v16, 0.0 }
 0x105   : > { %v508_v22 = vmax.f32 %v484_v18, 0.0 }
 0x106   : > { %v518_v23 = vpack.c.bf16 %v510_v20, %v509_v19  ;;  %v1121_v20 = vld [vmem:[%s1496_s6] ss:$0 sm:$0xff] }
 0x107   : > { %v517_v24 = vpack.c.bf16 %v508_v22, %v507_v21 }
 0x109   : > { %1224 = vmatprep.mubr.msk.bf16.mxu1 %vm558_vm2, %v517_v24 }
 0x10a   : > { %1225 = vmatmul.mubr.msk.bf16.gmra.mrb[12].mxu1 %vm558_vm2, %v518_v23 }
 0x1c5   : > { %v1214_v28 = vpop.f32.mrb[0].mxu1 }
 0x1c6   : > { %v626_v29 = vadd.f32 %v1214_v28, %v1108_v27  ;;  %v617_v30 = vpop.f32.mrb[1].mxu1 }
 0x1c7   : > { %v618_v31 = vadd.f32 %v1108_v27, %v617_v30  ;;  %v1215_v32 = vpop.f32.mrb[2].mxu1 }
 0x1c8   : > { %v629_v33 = vadd.f32 %v1215_v32, %v1108_v27  ;;  %v620_v34 = vpop.f32.mrb[3].mxu1  ;;  %v682_v36 = vmax.f32 %v626_v29, 0.0 }
 0x1c9   : > { %v621_v35 = vadd.f32 %v1108_v27, %v620_v34  ;;  %v680_v38 = vmax.f32 %v618_v31, 0.0 }
 0x1ca   : > { %v683_v37 = vmax.f32 %v629_v33, 0.0 }
 0x1cb   : > { %v681_v39 = vmax.f32 %v621_v35, 0.0 }
 0x1cc   : > { %v697_v40 = vpack.c.bf16 %v683_v37, %v682_v36 }
 0x1cd   : > { %v696_v41 = vpack.c.bf16 %v681_v39, %v680_v38  ;;  %v1218_v42 = vpop.f32.mrb[4].mxu1 }
 0x1ce   : > { %v642_v43 = vadd.f32 %v1218_v42, %v1108_v27  ;;  %v633_v44 = vpop.f32.mrb[5].mxu1 }
 0x1cf   : > { %v634_v45 = vadd.f32 %v1108_v27, %v633_v44  ;;  %v1219_v46 = vpop.f32.mrb[6].mxu1  ;;  %1232 = vmatprep.mubr.msk.bf16.mxu0 %vm727_vm3, %v696_v41 }
 0x1d0   : > { %v645_v47 = vadd.f32 %v1219_v46, %v1108_v27  ;;  %v636_v48 = vpop.f32.mrb[7].mxu1  ;;  %1233 = vmatmul.mubr.msk.bf16.vlgmr.msra.gmra.mrb[16].mxu0 %vm727_vm3, %v697_v40  ;;  %v686_v50 = vmax.f32 %v642_v43, 0.0 }
 0x1d1   : > { %v637_v49 = vadd.f32 %v1108_v27, %v636_v48  ;;  %v684_v52 = vmax.f32 %v634_v45, 0.0 }
 0x1d2   : > { %v687_v51 = vmax.f32 %v645_v47, 0.0 }
 0x1d3   : > { %v685_v53 = vmax.f32 %v637_v49, 0.0 }
 0x1d4   : > { %v699_v54 = vpack.c.bf16 %v687_v51, %v686_v50 }
 0x1d5   : > { %v698_v55 = vpack.c.bf16 %v685_v53, %v684_v52  ;;  %v1222_v56 = vpop.f32.mrb[8].mxu1 }
 0x1d6   : > { %v658_v57 = vadd.f32 %v1222_v56, %v1108_v27  ;;  %v649_v58 = vpop.f32.mrb[9].mxu1 }
 0x1d7   : > { %v650_v59 = vadd.f32 %v1108_v27, %v649_v58  ;;  %v1223_v60 = vpop.f32.mrb[10].mxu1  ;;  %1236 = vmatprep.mubr.msk.bf16.mxu0 %vm727_vm3, %v698_v55 }
 0x1d8   : > { %v661_v61 = vadd.f32 %v1223_v60, %v1108_v27  ;;  %v652_v62 = vpop.f32.mrb[11].mxu1  ;;  %1237 = vmatmul.mubr.msk.bf16.gmra.mrb[20].mxu0 %vm727_vm3, %v699_v54  ;;  %v690_v0 = vmax.f32 %v658_v57, 0.0 }
 0x1d9   : > { %v653_v63 = vadd.f32 %v1108_v27, %v652_v62  ;;  %v688_v2 = vmax.f32 %v650_v59, 0.0 }
 0x1da   : > { %v691_v1 = vmax.f32 %v661_v61, 0.0 }
 0x1db   : > { %v689_v3 = vmax.f32 %v653_v63, 0.0 }
 0x1dc   : > { %v701_v4 = vpack.c.bf16 %v691_v1, %v690_v0 }
 0x1dd   : > { %v700_v5 = vpack.c.bf16 %v689_v3, %v688_v2  ;;  %v1226_v6 = vpop.f32.mrb[12].mxu1 }
 0x1de   : > { %v674_v7 = vadd.f32 %v1226_v6, %v1108_v27  ;;  %v665_v8 = vpop.f32.mrb[13].mxu1 }
 0x1df   : > { %v666_v9 = vadd.f32 %v1108_v27, %v665_v8  ;;  %v1227_v10 = vpop.f32.mrb[14].mxu1  ;;  %1240 = vmatprep.mubr.msk.bf16.mxu0 %vm727_vm3, %v700_v5 }
 0x1e0   : > { %v677_v11 = vadd.f32 %v1227_v10, %v1108_v27  ;;  %v668_v12 = vpop.f32.mrb[15].mxu1  ;;  %1241 = vmatmul.mubr.msk.bf16.gmra.mrb[24].mxu0 %vm727_vm3, %v701_v4  ;;  %v694_v14 = vmax.f32 %v674_v7, 0.0 }
 0x1e1   : > { %v669_v13 = vadd.f32 %v1108_v27, %v668_v12  ;;  %v692_v16 = vmax.f32 %v666_v9, 0.0 }
 0x1e2   : > { %v695_v15 = vmax.f32 %v677_v11, 0.0 }
 0x1e3   : > { %v693_v17 = vmax.f32 %v669_v13, 0.0  ;;  %v1132_v13 = vld [vmem:[%s1498_s8] ss:$0 sm:$0xff] }
 0x1e4   : > { %v703_v18 = vpack.c.bf16 %v695_v15, %v694_v14 }
 0x1e5   : > { %v702_v19 = vpack.c.bf16 %v693_v17, %v692_v16 }
 0x1e7   : > { %1244 = vmatprep.mubr.msk.bf16.mxu0 %vm727_vm3, %v702_v19 }
 0x1e8   : > { %1245 = vmatmul.mubr.msk.bf16.gmra.mrb[28].mxu0 %vm727_vm3, %v703_v18 }
 0x2a3   : > { %v1234_v21 = vpop.f32.mrb[16].mxu0 }
 0x2a4   : > { %v795_v22 = vadd.f32 %v1234_v21, %v1121_v20  ;;  %v786_v23 = vpop.f32.mrb[17].mxu0 }
 0x2a5   : > { %v787_v24 = vadd.f32 %v1121_v20, %v786_v23  ;;  %v1235_v25 = vpop.f32.mrb[18].mxu0 }
 0x2a6   : > { %v798_v26 = vadd.f32 %v1235_v25, %v1121_v20  ;;  %v789_v27 = vpop.f32.mrb[19].mxu0  ;;  %v851_v29 = vmax.f32 %v795_v22, 0.0 }
 0x2a7   : > { %v790_v28 = vadd.f32 %v1121_v20, %v789_v27  ;;  %v849_v31 = vmax.f32 %v787_v24, 0.0 }
 0x2a8   : > { %v852_v30 = vmax.f32 %v798_v26, 0.0 }
 0x2a9   : > { %v850_v32 = vmax.f32 %v790_v28, 0.0 }
 0x2aa   : > { %v866_v33 = vpack.c.bf16 %v852_v30, %v851_v29 }
 0x2ab   : > { %v865_v34 = vpack.c.bf16 %v850_v32, %v849_v31  ;;  %v1238_v35 = vpop.f32.mrb[20].mxu0 }
 0x2ac   : > { %v811_v36 = vadd.f32 %v1238_v35, %v1121_v20  ;;  %v802_v37 = vpop.f32.mrb[21].mxu0 }
 0x2ad   : > { %v803_v38 = vadd.f32 %v1121_v20, %v802_v37  ;;  %v1239_v39 = vpop.f32.mrb[22].mxu0  ;;  %1252 = vmatprep.mubr.msk.bf16.mxu1 %vm727_vm3, %v865_v34 }
 0x2ae   : > { %v814_v40 = vadd.f32 %v1239_v39, %v1121_v20  ;;  %v805_v41 = vpop.f32.mrb[23].mxu0  ;;  %1253 = vmatmul.mubr.msk.bf16.vlgmr.msra.gmra.mrb[16].mxu1 %vm727_vm3, %v866_v33  ;;  %v855_v43 = vmax.f32 %v811_v36, 0.0 }
 0x2af   : > { %v806_v42 = vadd.f32 %v1121_v20, %v805_v41  ;;  %v853_v45 = vmax.f32 %v803_v38, 0.0 }
 0x2b0   : > { %v856_v44 = vmax.f32 %v814_v40, 0.0 }
 0x2b1   : > { %v854_v46 = vmax.f32 %v806_v42, 0.0 }
 0x2b2   : > { %v868_v47 = vpack.c.bf16 %v856_v44, %v855_v43 }
 0x2b3   : > { %v867_v48 = vpack.c.bf16 %v854_v46, %v853_v45  ;;  %v1242_v49 = vpop.f32.mrb[24].mxu0 }
 0x2b4   : > { %v827_v50 = vadd.f32 %v1242_v49, %v1121_v20  ;;  %v818_v51 = vpop.f32.mrb[25].mxu0 }
 0x2b5   : > { %v819_v52 = vadd.f32 %v1121_v20, %v818_v51  ;;  %v1243_v53 = vpop.f32.mrb[26].mxu0  ;;  %1256 = vmatprep.mubr.msk.bf16.mxu1 %vm727_vm3, %v867_v48 }
 0x2b6   : > { %v830_v54 = vadd.f32 %v1243_v53, %v1121_v20  ;;  %v821_v55 = vpop.f32.mrb[27].mxu0  ;;  %1257 = vmatmul.mubr.msk.bf16.gmra.mrb[20].mxu1 %vm727_vm3, %v868_v47  ;;  %v859_v57 = vmax.f32 %v827_v50, 0.0 }
 0x2b7   : > { %v822_v56 = vadd.f32 %v1121_v20, %v821_v55  ;;  %v857_v59 = vmax.f32 %v819_v52, 0.0 }
 0x2b8   : > { %v860_v58 = vmax.f32 %v830_v54, 0.0 }
 0x2b9   : > { %v858_v60 = vmax.f32 %v822_v56, 0.0 }
 0x2ba   : > { %v870_v61 = vpack.c.bf16 %v860_v58, %v859_v57 }
 0x2bb   : > { %v869_v62 = vpack.c.bf16 %v858_v60, %v857_v59  ;;  %v1246_v63 = vpop.f32.mrb[28].mxu0 }
 0x2bc   : > { %v843_v0 = vadd.f32 %v1246_v63, %v1121_v20  ;;  %v834_v1 = vpop.f32.mrb[29].mxu0 }
 0x2bd   : > { %v835_v2 = vadd.f32 %v1121_v20, %v834_v1  ;;  %v1247_v3 = vpop.f32.mrb[30].mxu0  ;;  %1260 = vmatprep.mubr.msk.bf16.mxu1 %vm727_vm3, %v869_v62 }
 0x2be   : > { %v846_v4 = vadd.f32 %v1247_v3, %v1121_v20  ;;  %v837_v5 = vpop.f32.mrb[31].mxu0  ;;  %1261 = vmatmul.mubr.msk.bf16.gmra.mrb[24].mxu1 %vm727_vm3, %v870_v61  ;;  %v863_v7 = vmax.f32 %v843_v0, 0.0 }
 0x2bf   : > { %v838_v6 = vadd.f32 %v1121_v20, %v837_v5  ;;  %v861_v9 = vmax.f32 %v835_v2, 0.0 }
 0x2c0   : > { %v864_v8 = vmax.f32 %v846_v4, 0.0 }
 0x2c1   : > { %v862_v10 = vmax.f32 %v838_v6, 0.0 }
 0x2c2   : > { %v872_v11 = vpack.c.bf16 %v864_v8, %v863_v7 }
 0x2c3   : > { %v871_v12 = vpack.c.bf16 %v862_v10, %v861_v9 }
 0x2c5   : > { %1264 = vmatprep.mubr.msk.bf16.mxu1 %vm727_vm3, %v871_v12 }
 0x2c6   : > { %1265 = vmatmul.mubr.msk.bf16.gmra.mrb[28].mxu1 %vm727_vm3, %v872_v11 }
 0x381   : > { %v1254_v14 = vpop.f32.mrb[16].mxu1 }
 0x382   : > { %v963_v15 = vadd.f32 %v1254_v14, %v1132_v13  ;;  %v954_v16 = vpop.f32.mrb[17].mxu1 }
 0x383   : > { %v955_v17 = vadd.f32 %v1132_v13, %v954_v16  ;;  %v1255_v18 = vpop.f32.mrb[18].mxu1 }
 0x384   : > { %1020 = vst.msk [vmem:[%s1453_s26 + $0x10] sm:$0xff] %vm1017_vm4, %v963_v15  ;;  %v966_v19 = vadd.f32 %v1255_v18, %v1132_v13  ;;  %v957_v20 = vpop.f32.mrb[19].mxu1 }
 0x385   : > { %1018 = vst.msk [vmem:[%s1453_s26] sm:$0xff] %vm1017_vm4, %v955_v17  ;;  %v958_v21 = vadd.f32 %v1132_v13, %v957_v20 }
 0x386   : > { %1021 = vst.msk [vmem:[%s1453_s26 + $0x18] sm:$0xff] %vm1017_vm4, %v966_v19 }
 0x387   : > { %1019 = vst.msk [vmem:[%s1453_s26 + $0x8] sm:$0xff] %vm1017_vm4, %v958_v21 }
 0x389   : > { %v1258_v22 = vpop.f32.mrb[20].mxu1 }
 0x38a   : > { %v979_v23 = vadd.f32 %v1258_v22, %v1132_v13  ;;  %v970_v24 = vpop.f32.mrb[21].mxu1 }
 0x38b   : > { %v971_v25 = vadd.f32 %v1132_v13, %v970_v24  ;;  %v1259_v26 = vpop.f32.mrb[22].mxu1 }
 0x38c   : > { %1024 = vst.msk [vmem:[%s1453_s26 + $0x30] sm:$0xff] %vm1017_vm4, %v979_v23  ;;  %v982_v27 = vadd.f32 %v1259_v26, %v1132_v13  ;;  %v973_v28 = vpop.f32.mrb[23].mxu1 }
 0x38d   : > { %1022 = vst.msk [vmem:[%s1453_s26 + $0x20] sm:$0xff] %vm1017_vm4, %v971_v25  ;;  %v974_v29 = vadd.f32 %v1132_v13, %v973_v28 }
 0x38e   : > { %1025 = vst.msk [vmem:[%s1453_s26 + $0x38] sm:$0xff] %vm1017_vm4, %v982_v27 }
 0x38f   : > { %1023 = vst.msk [vmem:[%s1453_s26 + $0x28] sm:$0xff] %vm1017_vm4, %v974_v29 }
 0x391   : > { %v1262_v30 = vpop.f32.mrb[24].mxu1 }
 0x392   : > { %v995_v31 = vadd.f32 %v1262_v30, %v1132_v13  ;;  %v986_v32 = vpop.f32.mrb[25].mxu1 }
 0x393   : > { %v987_v33 = vadd.f32 %v1132_v13, %v986_v32  ;;  %v1263_v34 = vpop.f32.mrb[26].mxu1 }
 0x394   : > { %1028 = vst.msk [vmem:[%s1453_s26 + $0x50] sm:$0xff] %vm1017_vm4, %v995_v31  ;;  %v998_v35 = vadd.f32 %v1263_v34, %v1132_v13  ;;  %v989_v36 = vpop.f32.mrb[27].mxu1 }
 0x395   : > { %1026 = vst.msk [vmem:[%s1453_s26 + $0x40] sm:$0xff] %vm1017_vm4, %v987_v33  ;;  %v990_v37 = vadd.f32 %v1132_v13, %v989_v36 }
 0x396   : > { %1029 = vst.msk [vmem:[%s1453_s26 + $0x58] sm:$0xff] %vm1017_vm4, %v998_v35 }
 0x397   : > { %1027 = vst.msk [vmem:[%s1453_s26 + $0x48] sm:$0xff] %vm1017_vm4, %v990_v37 }
 0x399   : > { %v1266_v38 = vpop.f32.mrb[28].mxu1 }
 0x39a   : > { %v1011_v39 = vadd.f32 %v1266_v38, %v1132_v13  ;;  %v1002_v40 = vpop.f32.mrb[29].mxu1 }
 0x39b   : > { %v1003_v41 = vadd.f32 %v1132_v13, %v1002_v40  ;;  %v1267_v42 = vpop.f32.mrb[30].mxu1 }
 0x39c   : > { %1032 = vst.msk [vmem:[%s1453_s26 + $0x70] sm:$0xff] %vm1017_vm4, %v1011_v39  ;;  %v1014_v43 = vadd.f32 %v1267_v42, %v1132_v13  ;;  %v1005_v44 = vpop.f32.mrb[31].mxu1 }
 0x39d   : > { %1030 = vst.msk [vmem:[%s1453_s26 + $0x60] sm:$0xff] %vm1017_vm4, %v1003_v41  ;;  %v1006_v45 = vadd.f32 %v1132_v13, %v1005_v44 }
 0x39e   : > { %1033 = vst.msk [vmem:[%s1453_s26 + $0x78] sm:$0xff] %vm1017_vm4, %v1014_v43 }
 0x39f   : > { %1031 = vst.msk [vmem:[%s1453_s26 + $0x68] sm:$0xff] %vm1017_vm4, %v1006_v45 }
 0x3a0 PF: > { %s19_s30 = sadd.s32 1, %s1291_s30  }
 0x3a1   : > { %p16_p4 = scmp.ge.s32.totalorder %s19_s30, 4  }
 0x3a3   :  { %18 = sbr.rel (!%p16_p4) target bundleno = 1 (0x1), region = 86 }

</bundles_post_ra>
